<compile_context>
chip_gen: v7x
topology: tpu7x:2x2x1
jax: 0.10.0
libtpu: 0.0.40
codegen_flags: <defaults>
</compile_context>

<pallas_src>
import functools

import jax
import jax.numpy as jnp
from jax.experimental import pallas as pl
from jax.experimental.pallas import tpu as pltpu

BN_EPS = 1e-3
LANE = 128            # lane-dense N tile (multiple of 128 on all TPU gens)
MAX_ROW_TILE = 256    # M-tile for GEMM / VPU kernels
VMEM_LIMIT = 32 * 1024 * 1024


# ------------------------------ small helpers -------------------------------

def _ru(x, m):
    return ((x + m - 1) // m) * m


def _row_tile(m):
    """Pad a row count to >=8 and to a multiple of the chosen row tile."""
    m8 = _ru(max(int(m), 1), 8)
    tm = min(MAX_ROW_TILE, m8)
    return _ru(m8, tm), tm


def _pick_tk(k):
    """K tile: stream K in 128..512 chunks when it divides evenly, else one shot."""
    if k <= 512:
        return k
    for t in (512, 384, 256, 128):
        if k % t == 0:
            return t
    return k


def _extract_patches(x, k, stride, pad):
    """x [B,H,W,C] -> im2col patches [B,Ho,Wo,k,k,C] (XLA glue)."""
    B, H, W, C = x.shape
    xp = jnp.pad(x, ((0, 0), (pad, pad), (pad, pad), (0, 0)))
    Ho = (H + 2 * pad - k) // stride + 1
    Wo = (W + 2 * pad - k) // stride + 1
    rows = []
    for di in range(k):
        cols = []
        for dj in range(k):
            cols.append(xp[:, di:di + (Ho - 1) * stride + 1:stride,
                           dj:dj + (Wo - 1) * stride + 1:stride, :])
        rows.append(jnp.stack(cols, axis=3))
    return jnp.stack(rows, axis=3), Ho, Wo


def _extract_taps(x, k, stride, pad):
    """x [B,H,W,C] -> depthwise taps [k*k, B, Ho, Wo, C] (tap-major layout)."""
    B, H, W, C = x.shape
    xp = jnp.pad(x, ((0, 0), (pad, pad), (pad, pad), (0, 0)))
    Ho = (H + 2 * pad - k) // stride + 1
    Wo = (W + 2 * pad - k) // stride + 1
    taps = []
    for di in range(k):
        for dj in range(k):
            taps.append(xp[:, di:di + (Ho - 1) * stride + 1:stride,
                            dj:dj + (Wo - 1) * stride + 1:stride, :])
    return jnp.stack(taps, axis=0), Ho, Wo


# ------------------------------ Pallas kernels -------------------------------

def _gemm_kernel(*refs, nk, has_gate, has_res, act):
    """K-streamed GEMM: acc += (x [* gate]) @ w ; epilogue: *s + b, act, +res."""
    x_ref, w_ref, s_ref, b_ref = refs[:4]
    pos = 4
    gate_ref = res_ref = None
    if has_gate:
        gate_ref = refs[pos]; pos += 1
    if has_res:
        res_ref = refs[pos]; pos += 1
    o_ref, acc_ref = refs[pos], refs[pos + 1]

    kstep = pl.program_id(3)

    @pl.when(kstep == 0)
    def _():
        acc_ref[...] = jnp.zeros_like(acc_ref)

    x = x_ref[...]                                   # (tm, tk) bf16
    if has_gate:
        x = x * gate_ref[...]                        # fused SE channel gate
    acc_ref[...] += jnp.dot(x, w_ref[...], preferred_element_type=jnp.float32)

    @pl.when(kstep == nk - 1)
    def _():
        y = acc_ref[...] * s_ref[...] + b_ref[...]   # folded BatchNorm (f32)
        if act == "silu":
            y = y * jax.nn.sigmoid(y)
        if has_res:
            y = y + res_ref[...]                     # fused residual add
        o_ref[...] = y


def _dw_kernel(p_ref, w_ref, s_ref, b_ref, o_ref, *, taps):
    """Depthwise conv as a 9-tap MAC over [taps, tm, 128] slabs, + BN + SiLU."""
    acc = p_ref[0] * w_ref[pl.ds(0, 1), :]
    for t in range(1, taps):
        acc = acc + p_ref[t] * w_ref[pl.ds(t, 1), :]
    y = acc * s_ref[...] + b_ref[...]
    o_ref[...] = y * jax.nn.sigmoid(y)


def _pool_kernel(x_ref, o_ref, acc_ref, *, n_s, inv_n):
    """Mean over the spatial axis, accumulated across spatial grid steps."""
    s = pl.program_id(1)

    @pl.when(s == 0)
    def _():
        acc_ref[...] = jnp.zeros_like(acc_ref)

    acc_ref[...] += jnp.sum(x_ref[...], axis=1)

    @pl.when(s == n_s - 1)
    def _():
        o_ref[...] = acc_ref[...] * inv_n


# ------------------------------ kernel wrappers ------------------------------

def _gemm(x, w, scale, bias, *, act, gate=None, residual=None):
    """x: [B, Mp, K] bf16, w: [K, Np] bf16, scale/bias: [1, Np] f32,
    gate: [B, 1, K] bf16 or None, residual: [B, Mp, Np] f32 or None."""
    B, Mp, K = x.shape
    Np = w.shape[1]
    tm = min(MAX_ROW_TILE, Mp)
    tk = _pick_tk(K)
    nk = K // tk
    nb = LANE
    grid = (B, Mp // tm, Np // nb, nk)

    in_specs = [
        pl.BlockSpec((None, tm, tk), lambda b, i, j, k: (b, i, k)),
        pl.BlockSpec((tk, nb), lambda b, i, j, k: (k, j)),
        pl.BlockSpec((1, nb), lambda b, i, j, k: (0, j)),
        pl.BlockSpec((1, nb), lambda b, i, j, k: (0, j)),
    ]
    args = [x, w, scale, bias]
    if gate is not None:
        in_specs.append(pl.BlockSpec((None, 1, tk), lambda b, i, j, k: (b, 0, k)))
        args.append(gate)
    if residual is not None:
        in_specs.append(pl.BlockSpec((None, tm, nb), lambda b, i, j, k: (b, i, j)))
        args.append(residual)

    kernel = functools.partial(_gemm_kernel, nk=nk, has_gate=gate is not None,
                               has_res=residual is not None, act=act)
    return pl.pallas_call(
        kernel,
        out_shape=jax.ShapeDtypeStruct((B, Mp, Np), jnp.float32),
        grid_spec=pltpu.PrefetchScalarGridSpec(
            num_scalar_prefetch=0,
            grid=grid,
            in_specs=in_specs,
            out_specs=pl.BlockSpec((None, tm, nb), lambda b, i, j, k: (b, i, j)),
            scratch_shapes=[pltpu.VMEM((tm, nb), jnp.float32)],
        ),
        compiler_params=pltpu.CompilerParams(
            dimension_semantics=("parallel", "parallel", "parallel", "arbitrary"),
            vmem_limit_bytes=VMEM_LIMIT),
    )(*args)


@functools.partial(jax.jit, static_argnames=("ksize", "stride", "act", "nout"))
def conv_bn_act(x, w, scale, bias, *, ksize, stride, act, nout,
                gate=None, residual=None):
    """Conv (1x1 or 3x3, as GEMM) + folded BN + activation (+gate/+residual)."""
    B, H, W, Cin = x.shape
    Npad = w.shape[1]
    if ksize == 1:
        Ho, Wo = H, W                               # 1x1 convs are stride 1 here
        xm = x.reshape(B, H * W, Cin)
    else:
        pad = (ksize - 1) // 2
        patches, Ho, Wo = _extract_patches(x, ksize, stride, pad)
        xm = patches.reshape(B, Ho * Wo, ksize * ksize * Cin)
    M = Ho * Wo
    Mp, _ = _row_tile(M)
    xm = jnp.pad(xm, ((0, 0), (0, Mp - M), (0, 0))).astype(jnp.bfloat16)

    g = None
    if gate is not None:
        g = gate.reshape(B, 1, gate.shape[-1]).astype(jnp.bfloat16)
    r = None
    if residual is not None:
        rm = residual.reshape(B, M, residual.shape[-1])
        r = jnp.pad(rm, ((0, 0), (0, Mp - M), (0, Npad - residual.shape[-1])))

    y = _gemm(xm, w, scale, bias, act=act, gate=g, residual=r)
    return y[:, :M, :nout].reshape(B, Ho, Wo, nout)


@functools.partial(jax.jit, static_argnames=("stride",))
def depthwise_conv_bn_silu(x, w, scale, bias, *, stride):
    """3x3 depthwise conv + folded BN + SiLU, taps laid out [9, M, C]."""
    B, H, W, C = x.shape
    k = 3
    taps, Ho, Wo = _extract_taps(x, k, stride, (k - 1) // 2)
    Cp = scale.shape[1]
    M = B * Ho * Wo
    Mp, tm = _row_tile(M)
    pm = taps.reshape(k * k, M, C)
    pm = jnp.pad(pm, ((0, 0), (0, Mp - M), (0, Cp - C)))
    grid = (Mp // tm, Cp // LANE)
    out = pl.pallas_call(
        functools.partial(_dw_kernel, taps=k * k),
        out_shape=jax.ShapeDtypeStruct((Mp, Cp), jnp.float32),
        grid_spec=pltpu.PrefetchScalarGridSpec(
            num_scalar_prefetch=0,
            grid=grid,
            in_specs=[
                pl.BlockSpec((k * k, tm, LANE), lambda i, j: (0, i, j)),
                pl.BlockSpec((k * k, LANE), lambda i, j: (0, j)),
                pl.BlockSpec((1, LANE), lambda i, j: (0, j)),
                pl.BlockSpec((1, LANE), lambda i, j: (0, j)),
            ],
            out_specs=pl.BlockSpec((tm, LANE), lambda i, j: (i, j)),
        ),
        compiler_params=pltpu.CompilerParams(
            dimension_semantics=("parallel", "parallel"),
            vmem_limit_bytes=VMEM_LIMIT),
    )(pm, w, scale, bias)
    return out[:M, :C].reshape(B, Ho, Wo, C)


@jax.jit
def global_avg_pool(x):
    """AdaptiveAvgPool2d(1) + flatten: [B,H,W,C] -> [B,C] (tiled reduction)."""
    B, H, W, C = x.shape
    HW = H * W
    Cp = _ru(C, LANE)
    Sp, ts = _row_tile(HW)
    x3 = jnp.pad(x.reshape(B, HW, C), ((0, 0), (0, Sp - HW), (0, Cp - C)))
    ns = Sp // ts
    out = pl.pallas_call(
        functools.partial(_pool_kernel, n_s=ns, inv_n=1.0 / HW),
        out_shape=jax.ShapeDtypeStruct((B, Cp), jnp.float32),
        grid_spec=pltpu.PrefetchScalarGridSpec(
            num_scalar_prefetch=0,
            grid=(Cp // LANE, ns),
            in_specs=[pl.BlockSpec((B, ts, LANE), lambda j, s: (0, s, j))],
            out_specs=pl.BlockSpec((B, LANE), lambda j, s: (0, j)),
            scratch_shapes=[pltpu.VMEM((B, LANE), jnp.float32)],
        ),
        compiler_params=pltpu.CompilerParams(
            dimension_semantics=("parallel", "arbitrary"),
            vmem_limit_bytes=VMEM_LIMIT),
    )(x3)
    return out[:, :C]


@jax.jit
def se_gate(x, w1, b1, w2, b2):
    """SqueezeExcitation gate: avgpool -> fc1(SiLU) -> fc2(Sigmoid) -> [B, C].
    The tiny FCs stay in plain jnp; the gate itself is fused into the proj GEMM."""
    pooled = global_avg_pool(x)
    h = pooled @ w1 + b1
    h = h * jax.nn.sigmoid(h)
    return jax.nn.sigmoid(h @ w2 + b2)


# ------------------------- EfficientNetV2-L definition ----------------------

# (block_type, expand_ratio, kernel, stride, in_c, out_c, num_layers)
V2_L_CONFIG = [
    ("fused", 1, 3, 1, 32, 32, 4),
    ("fused", 4, 3, 2, 32, 64, 7),
    ("fused", 4, 3, 2, 64, 96, 7),
    ("mb",    4, 3, 2, 96, 192, 10),
    ("mb",    6, 3, 1, 192, 224, 19),
    ("mb",    6, 3, 2, 224, 384, 25),
    ("mb",    6, 3, 1, 384, 640, 7),
]
LAST_CONV_OUT = 1280


def _fold_bn(key, c):
    k1, k2 = jax.random.split(key)
    gamma = 1.0 + 0.1 * jax.random.normal(k1, (c,), jnp.float32)
    beta = 0.05 * jax.random.normal(k2, (c,), jnp.float32)
    running_mean = jnp.zeros((c,), jnp.float32)
    running_var = jnp.ones((c,), jnp.float32)
    scale = gamma / jnp.sqrt(running_var + BN_EPS)
    bias = beta - running_mean * scale
    return scale, bias


def _conv_bn(key, k, cin, cout):
    """GEMM-ready conv+BN params: weight [k*k*cin, Npad] bf16, scale/bias [1, Npad] f32."""
    kw, kb = jax.random.split(key)
    std = (2.0 / (k * k * cin)) ** 0.5
    w = std * jax.random.normal(kw, (k, k, cin, cout), jnp.float32)
    s, b = _fold_bn(kb, cout)
    cpad = _ru(cout, LANE)
    wg = jnp.pad(w.reshape(k * k * cin, cout),
                 ((0, 0), (0, cpad - cout))).astype(jnp.bfloat16)
    sp = jnp.pad(s, (0, cpad - cout)).reshape(1, cpad)
    bp = jnp.pad(b, (0, cpad - cout)).reshape(1, cpad)
    return {"w": wg, "s": sp, "b": bp}


def _dw_bn(key, k, c):
    """Depthwise conv+BN params: weight [k*k, Cpad] f32, scale/bias [1, Cpad] f32."""
    kw, kb = jax.random.split(key)
    std = (2.0 / (k * k)) ** 0.5
    w = std * jax.random.normal(kw, (k * k, c), jnp.float32)
    s, b = _fold_bn(kb, c)
    cpad = _ru(c, LANE)
    wp = jnp.pad(w, ((0, 0), (0, cpad - c)))
    sp = jnp.pad(s, (0, cpad - c)).reshape(1, cpad)
    bp = jnp.pad(b, (0, cpad - c)).reshape(1, cpad)
    return {"w": wp, "s": sp, "b": bp}


def init_params(key, input_channels=4):
    # TODO(synk): `transfer=True` pretrained-weight loading is not reproduced;
    # parameters are randomly initialized (transfer=False path).
    keys = iter(jax.random.split(key, 2048))
    nk = lambda: next(keys)
    params = {"stem": _conv_bn(nk(), 3, input_channels, 32)}
    blocks = []
    for (btype, expand, k, stride, cin, cout, nlayers) in V2_L_CONFIG:
        for li in range(nlayers):
            bin_c = cin if li == 0 else cout
            s = stride if li == 0 else 1
            exp_c = bin_c * expand
            blk = {"type": btype, "stride": s, "in": bin_c, "out": cout, "exp": exp_c}
            if btype == "fused":
                if exp_c != bin_c:
                    blk["expand"] = _conv_bn(nk(), k, bin_c, exp_c)
                    blk["proj"] = _conv_bn(nk(), 1, exp_c, cout)
                else:
                    blk["single"] = _conv_bn(nk(), k, bin_c, cout)
            else:  # MBConv
                sq = max(1, bin_c // 4)
                blk["expand"] = _conv_bn(nk(), 1, bin_c, exp_c)
                blk["dw"] = _dw_bn(nk(), k, exp_c)
                blk["se_w1"] = ((2.0 / exp_c) ** 0.5) * jax.random.normal(
                    nk(), (exp_c, sq), jnp.float32)
                blk["se_b1"] = jnp.zeros((sq,), jnp.float32)
                blk["se_w2"] = ((2.0 / sq) ** 0.5) * jax.random.normal(
                    nk(), (sq, exp_c), jnp.float32)
                blk["se_b2"] = jnp.zeros((exp_c,), jnp.float32)
                blk["proj"] = _conv_bn(nk(), 1, exp_c, cout)
            blocks.append(blk)
    params["blocks"] = blocks
    params["head"] = _conv_bn(nk(), 1, V2_L_CONFIG[-1][5], LAST_CONV_OUT)
    return params


def _run_block(blk, x):
    inp = x
    use_res = blk["stride"] == 1 and blk["in"] == blk["out"]
    res = inp if use_res else None
    # TODO(synk): StochasticDepth is identity in eval mode; training-mode
    # random row-drop is not reproduced.
    if blk["type"] == "fused":
        if "single" in blk:
            c = blk["single"]
            y = conv_bn_act(x, c["w"], c["s"], c["b"], ksize=3,
                            stride=blk["stride"], act="silu", nout=blk["out"],
                            residual=res)
        else:
            e = blk["expand"]
            y = conv_bn_act(x, e["w"], e["s"], e["b"], ksize=3,
                            stride=blk["stride"], act="silu", nout=blk["exp"])
            p = blk["proj"]
            y = conv_bn_act(y, p["w"], p["s"], p["b"], ksize=1, stride=1,
                            act="none", nout=blk["out"], residual=res)
    else:  # MBConv
        e = blk["expand"]
        y = conv_bn_act(x, e["w"], e["s"], e["b"], ksize=1, stride=1,
                        act="silu", nout=blk["exp"])
        d = blk["dw"]
        y = depthwise_conv_bn_silu(y, d["w"], d["s"], d["b"], stride=blk["stride"])
        gate = se_gate(y, blk["se_w1"], blk["se_b1"], blk["se_w2"], blk["se_b2"])
        p = blk["proj"]
        # SE scale and residual add are fused into the projection GEMM.
        y = conv_bn_act(y, p["w"], p["s"], p["b"], ksize=1, stride=1,
                        act="none", nout=blk["out"], gate=gate, residual=res)
    return y


def efficientnet_forward(params, x_nchw):
    """Efficientnet(input_channels=4).forward in eval mode -> [B, 1280]."""
    x = jnp.transpose(x_nchw.astype(jnp.float32), (0, 2, 3, 1))  # NCHW -> NHWC
    st = params["stem"]
    x = conv_bn_act(x, st["w"], st["s"], st["b"], ksize=3, stride=2,
                    act="silu", nout=32)
    for blk in params["blocks"]:
        x = _run_block(blk, x)
    hd = params["head"]
    x = conv_bn_act(x, hd["w"], hd["s"], hd["b"], ksize=1, stride=1,
                    act="silu", nout=LAST_CONV_OUT)
    x = global_avg_pool(x)           # avgpool + flatten
    # classifier[0] = classifier[1] = nn.Identity()
    return x


# ----------------------------------- main -----------------------------------

if __name__ == "__main__":
    key = jax.random.PRNGKey(0)
    pkey, xkey = jax.random.split(key)
    params = init_params(pkey, input_channels=4)

    # small input consistent with the module: NCHW, 4 input channels
    x = jax.random.normal(xkey, (2, 4, 16, 16), jnp.float32)

    out = efficientnet_forward(params, x)
    out = jax.block_until_ready(out)

    assert out.shape == (2, 1280), out.shape
    assert bool(jnp.all(jnp.isfinite(out)))
    print("KERNEL_OK")
</pallas_src>

<mosaic_0001>
module attributes {stable_mosaic.version = 11 : i64} {
  func.func @_gemm_kernel(%arg0: i32, %arg1: i32, %arg2: i32, %arg3: i32, %arg4: memref<1x64x36xbf16, #tpu.memory_space<vmem>>, %arg5: memref<36x128xbf16, #tpu.memory_space<vmem>>, %arg6: memref<1x128xf32, #tpu.memory_space<vmem>>, %arg7: memref<1x128xf32, #tpu.memory_space<vmem>>, %arg8: memref<1x64x128xf32, #tpu.memory_space<vmem>>, %arg9: memref<64x128xf32, #tpu.memory_space<vmem>>) attributes {dimension_semantics = [#tpu.dimension_semantics<parallel>, #tpu.dimension_semantics<parallel>, #tpu.dimension_semantics<parallel>, #tpu.dimension_semantics<arbitrary>], iteration_bounds = array<i64: 2, 1, 1, 1>, scalar_prefetch = 0 : i64, scratch_operands = 1 : i64, tpu.core_type = #tpu.core_type<tc>, window_params = [{transform_indices = @transform_0, window_bounds = array<i64: 1, 64, 36>}, {transform_indices = @transform_1, window_bounds = array<i64: 36, 128>}, {transform_indices = @transform_2, window_bounds = array<i64: 1, 128>}, {transform_indices = @transform_3, window_bounds = array<i64: 1, 128>}, {transform_indices = @transform_4, window_bounds = array<i64: 1, 64, 128>}]} {
    %c0_i32 = arith.constant 0 : i32
    %0 = arith.cmpi eq, %arg3, %c0_i32 : i32
    %1 = arith.extui %0 : i1 to i32
    %c0_i32_0 = arith.constant 0 : i32
    %2 = arith.cmpi ne, %1, %c0_i32_0 : i32
    scf.if %2 {
      %cst_11 = arith.constant 0.000000e+00 : f32
      %13 = vector.broadcast %cst_11 : f32 to vector<64x128xf32>
      %c0_12 = arith.constant 0 : index
      %c0_13 = arith.constant 0 : index
      %14 = vector.load %arg9[%c0_12, %c0_13] : memref<64x128xf32, #tpu.memory_space<vmem>>, vector<64x128xf32>
      tpu.vector_store %arg9[%c0_12, %c0_13], %13 {strides = array<i32>} : memref<64x128xf32, #tpu.memory_space<vmem>>, vector<64x128xf32>,
    } else {
    }
    %c0 = arith.constant 0 : index
    %c0_1 = arith.constant 0 : index
    %c0_2 = arith.constant 0 : index
    %3 = vector.load %arg4[%c0, %c0_1, %c0_2] : memref<1x64x36xbf16, #tpu.memory_space<vmem>>, vector<1x64x36xbf16>
    %4 = vector.shape_cast %3 : vector<1x64x36xbf16> to vector<64x36xbf16>
    %c0_3 = arith.constant 0 : index
    %c0_4 = arith.constant 0 : index
    %5 = vector.load %arg9[%c0_3, %c0_4] : memref<64x128xf32, #tpu.memory_space<vmem>>, vector<64x128xf32>
    %c0_5 = arith.constant 0 : index
    %c0_6 = arith.constant 0 : index
    %6 = vector.load %arg5[%c0_5, %c0_6] : memref<36x128xbf16, #tpu.memory_space<vmem>>, vector<36x128xbf16>
    %cst = arith.constant dense<0.000000e+00> : vector<64x128xf32>
    %7 = tpu.matmul %4, %6, %cst {dimension_numbers = #tpu.dot_dimension_numbers<[1], [0], [0], [1], [0, 0, 1, 1], [], []>} : vector<64x36xbf16>, vector<36x128xbf16>, vector<64x128xf32> -> vector<64x128xf32>
    %8 = arith.addf %5, %7 : vector<64x128xf32>
    %c0_7 = arith.constant 0 : index
    %c0_8 = arith.constant 0 : index
    %9 = vector.load %arg9[%c0_7, %c0_8] : memref<64x128xf32, #tpu.memory_space<vmem>>, vector<64x128xf32>
    tpu.vector_store %arg9[%c0_7, %c0_8], %8 {strides = array<i32>} : memref<64x128xf32, #tpu.memory_space<vmem>>, vector<64x128xf32>,
    %c0_i32_9 = arith.constant 0 : i32
    %10 = arith.cmpi eq, %arg3, %c0_i32_9 : i32
    %11 = arith.extui %10 : i1 to i32
    %c0_i32_10 = arith.constant 0 : i32
    %12 = arith.cmpi ne, %11, %c0_i32_10 : i32
    scf.if %12 {
      %c0_11 = arith.constant 0 : index
      %c0_12 = arith.constant 0 : index
      %13 = vector.load %arg9[%c0_11, %c0_12] : memref<64x128xf32, #tpu.memory_space<vmem>>, vector<64x128xf32>
      %c0_13 = arith.constant 0 : index
      %c0_14 = arith.constant 0 : index
      %14 = vector.load %arg6[%c0_13, %c0_14] : memref<1x128xf32, #tpu.memory_space<vmem>>, vector<1x128xf32>
      %15 = vector.broadcast %14 : vector<1x128xf32> to vector<64x128xf32>
      %16 = arith.mulf %13, %15 : vector<64x128xf32>
      %c0_15 = arith.constant 0 : index
      %c0_16 = arith.constant 0 : index
      %17 = vector.load %arg7[%c0_15, %c0_16] : memref<1x128xf32, #tpu.memory_space<vmem>>, vector<1x128xf32>
      %18 = vector.broadcast %17 : vector<1x128xf32> to vector<64x128xf32>
      %19 = arith.addf %16, %18 : vector<64x128xf32>
      %20 = arith.negf %19 : vector<64x128xf32>
      %21 = math.exp %20 : vector<64x128xf32>
      %cst_17 = arith.constant 1.000000e+00 : f32
      %22 = vector.broadcast %cst_17 : f32 to vector<64x128xf32>
      %23 = arith.addf %22, %21 : vector<64x128xf32>
      %24 = arith.divf %22, %23 : vector<64x128xf32>
      %25 = arith.mulf %19, %24 : vector<64x128xf32>
      %c0_18 = arith.constant 0 : index
      %c0_19 = arith.constant 0 : index
      %c0_20 = arith.constant 0 : index
      %26 = vector.load %arg8[%c0_18, %c0_19, %c0_20] : memref<1x64x128xf32, #tpu.memory_space<vmem>>, vector<1x64x128xf32>
      %27 = vector.shape_cast %26 : vector<1x64x128xf32> to vector<64x128xf32>
      %28 = vector.shape_cast %25 : vector<64x128xf32> to vector<1x64x128xf32>
      tpu.vector_store %arg8[%c0_18, %c0_19, %c0_20], %28 {strides = array<i32>} : memref<1x64x128xf32, #tpu.memory_space<vmem>>, vector<1x64x128xf32>,
    } else {
    }
    return
  }
  func.func @transform_0(%arg0: i32, %arg1: i32, %arg2: i32, %arg3: i32) -> (i32, i32, i32) {
    %c0_i32 = arith.constant 0 : i32
    return %arg0, %arg1, %arg3 : i32, i32, i32
  }
  func.func @transform_1(%arg0: i32, %arg1: i32, %arg2: i32, %arg3: i32) -> (i32, i32) {
    %c0_i32 = arith.constant 0 : i32
    return %arg3, %arg2 : i32, i32
  }
  func.func @transform_2(%arg0: i32, %arg1: i32, %arg2: i32, %arg3: i32) -> (i32, i32) {
    %c0_i32 = arith.constant 0 : i32
    %c0_i32_0 = arith.constant 0 : i32
    return %c0_i32, %arg2 : i32, i32
  }
  func.func @transform_3(%arg0: i32, %arg1: i32, %arg2: i32, %arg3: i32) -> (i32, i32) {
    %c0_i32 = arith.constant 0 : i32
    %c0_i32_0 = arith.constant 0 : i32
    return %c0_i32, %arg2 : i32, i32
  }
  func.func @transform_4(%arg0: i32, %arg1: i32, %arg2: i32, %arg3: i32) -> (i32, i32, i32) {
    %c0_i32 = arith.constant 0 : i32
    return %arg0, %arg1, %arg2 : i32, i32, i32
  }
}

</mosaic_0001>

<bundles_post_ra>
// kernel: conv_bn_act.1
= control target key start
LH: loop header
LB: loop body
LE: loop exit
PB: predicated region body
PF: predicated region fallthrough
CT: control target
= control target key end

     0   :  { %s929_s15 = smov 0   ;;  %s931_s16 = smov 0   ;;  %s981_s0 = inlined_call_operand.vmem [shape: bf16[2,64,36], index: 0, kind: input, shape index: {}]   ;;  %s982_s1 = inlined_call_operand.vmem [shape: bf16[36,128], index: 1, kind: input, shape index: {}]   ;;  %s983_s2 = inlined_call_operand.vmem [shape: f32[1,128], index: 2, kind: input, shape index: {}]   ;;  %s984_s3 = inlined_call_operand.vmem [shape: f32[1,128], index: 3, kind: input, shape index: {}]   ;;  %s985_s4 = inlined_call_operand.vmem [shape: f32[2,64,128], index: 4, kind: output, shape index: {}]  }
   0x1   :  { %s933_s17 = smov 0  }
   0x2 LB: > { %s40_s18 = sadd.s32 1, %s898_s16  ;;  %p758_p0 = scmp.ge.s32.totalorder %s902_s17, 1  ;;  %s902_s17 = sphi %s933_s17, %s14_s17   ;;  %s898_s16 = sphi %s931_s16, %s987_s16   ;;  %s894_s15 = sphi %s929_s15, %s986_s15  }
   0x3   : > { %p42_p1 = scmp.ge.s32.totalorder %s40_s18, 2  ;;  %p236_p2 = scmp.lt.s32.totalorder %s902_s17, 3 }
   0x5   : > { %s989_s18 = smov (%p42_p1, %s40_s18), 0  ;;  %p237_p3 = pnand %p758_p0, %p236_p2 }
   0x6   : > { %v841_v0 = vld [vmem:[%s982_s1] sm:$0xff] (!%p237_p3)   ;;  %v842_v1 = vld [vmem:[%s982_s1 + $0x8] sm:$0xff] (!%p237_p3)   ;;  %p291_p4 = scmp.lt.s32.totalorder (!%p237_p3), %s894_s15, 1  ;;  %v843_v2 = vld [vmem:[%s982_s1 + $0x10] ss:$0 sps:$4 sm:$0x33] (!%p237_p3)  }
   0x7   : > { %240 = sbr.rel (%p237_p3) target bundleno = 271 (0x10f), region = 36  ;;  %795 = vmatprep.subr.bf16.mxu0 (!%p237_p3), %v841_v0  ;;  %809 = vmatprep.subr.bf16.mxu1 (!%p237_p3), %v841_v0  ;;  %vm413_vm0 = vcmask (!%p237_p3), 1041408   ;;  %vm400_vm1 = vcmask (!%p237_p3), 293888   ;;  %v774_v8 = vld [vmem:[%s983_s2] ss:$0 sm:$0xff] (!%p237_p3) }
   0x8   : > { %796 = vmatpush3.bf16.msra.mxu0 (!%p237_p3), %v841_v0  ;;  %812 = vmatpush3.bf16.msra.mxu1 (!%p237_p3), %v841_v0  ;;  %v415_v4 = vsel (!%p237_p3), %vm413_vm0, %v843_v2, 0  ;;  %v775_v10 = vld [vmem:[%s984_s3] ss:$0 sm:$0xff] (!%p237_p3) }
   0x9   : > { %797 = vmatprep.subr.bf16.mxu0 (!%p237_p3), %v842_v1  ;;  %810 = vmatprep.subr.bf16.mxu1 (!%p237_p3), %v842_v1 }
   0xc   : > { %798 = vmatpush3.bf16.msra.mxu0 (!%p237_p3), %v842_v1  ;;  %813 = vmatpush3.bf16.msra.mxu1 (!%p237_p3), %v842_v1 }
   0xd   : > { %815 = vmatprep.subr.msk.bf16.mxu0 (!%p237_p3), %vm413_vm0, %v843_v2  ;;  %816 = vmatprep.subr.msk.bf16.mxu1 (!%p237_p3), %vm413_vm0, %v843_v2 }
   0xe   : > { %s991_s15 = smov (!%p291_p4, %s894_s15), 1 }
   0xf   : > { %s786_s25 = sshll.u32 %s991_s15, 5  ;;  %s787_s7 = sshll.u32 %s991_s15, 6 }
  0x10   : > { %s301_s28 = scalar_lea.vmem %s981_s0, %s786_s25  ;;  %800 = vmatpush3.bf16.msra.mxu0 %v415_v4  ;;  %814 = vmatpush3.bf16.msra.mxu1 %v415_v4  ;;  %s329_s10 = scalar_lea.vmem %s985_s4, %s787_s7 }
  0x11   : > { %v844_v3 = vld [vmem:[%s301_s28] sm:$0xff]   ;;  %v845_v5 = vld [vmem:[%s301_s28 + $0x10] sm:$0xff]   ;;  %v846_v6 = vld [vmem:[%s301_s28 + $0x8] sm:$0xff]  }
  0x12   : > { %801 = vmatprep.mubr.msk.bf16.mxu0 %vm400_vm1, %v844_v3  ;;  %805 = vmatprep.mubr.msk.bf16.mxu1 %vm400_vm1, %v845_v5  ;;  %v847_v7 = vld [vmem:[%s301_s28 + $0x18] sm:$0xff]  }
  0x13   : > { %802 = vmatmul.mubr.msk.bf16.vlgmr.msra.gmra.mrb[0].mxu0 %vm400_vm1, %v846_v6  ;;  %806 = vmatmul.mubr.msk.bf16.vlgmr.msra.gmra.mrb[0].mxu1 %vm400_vm1, %v847_v7 }
  0xe6   : > { %v803_v9 = vpop.f32.mrb[0].mxu0  ;;  %v807_v11 = vpop.f32.mrb[0].mxu1 }
  0xe7   : > { %v518_v12 = vmul.f32 %v803_v9, %v774_v8  ;;  %v522_v13 = vmul.f32 %v807_v11, %v774_v8  ;;  %v451_v14 = vpop.f32.mrb[1].mxu0  ;;  %v467_v15 = vpop.f32.mrb[1].mxu1 }
  0xe8   : > { %v516_v16 = vmul.f32 %v774_v8, %v451_v14  ;;  %v520_v17 = vmul.f32 %v774_v8, %v467_v15  ;;  %v804_v18 = vpop.f32.mrb[2].mxu0  ;;  %v808_v19 = vpop.f32.mrb[2].mxu1 }
  0xe9   : > { %v533_v20 = vadd.f32 %v775_v10, %v518_v12  ;;  %v537_v21 = vadd.f32 %v775_v10, %v522_v13  ;;  %v519_v22 = vmul.f32 %v804_v18, %v774_v8  ;;  %v523_v23 = vmul.f32 %v808_v19, %v774_v8  ;;  %v454_v24 = vpop.f32.mrb[3].mxu0  ;;  %v470_v25 = vpop.f32.mrb[3].mxu1 }
  0xea   : > { %v531_v26 = vadd.f32 %v775_v10, %v516_v16  ;;  %v535_v27 = vadd.f32 %v775_v10, %v520_v17  ;;  %v517_v28 = vmul.f32 %v774_v8, %v454_v24  ;;  %v521_v29 = vmul.f32 %v774_v8, %v470_v25 }
  0xeb   : > { %v778_v30 = vmul.f32 -1.442695, %v533_v20  ;;  %v782_v31 = vmul.f32 -1.442695, %v537_v21  ;;  %v534_v32 = vadd.f32 %v775_v10, %v519_v22  ;;  %v538_v33 = vadd.f32 %v775_v10, %v523_v23 }
  0xec   : > { %v776_v34 = vmul.f32 -1.442695, %v531_v26  ;;  %v780_v35 = vmul.f32 -1.442695, %v535_v27  ;;  %v532_v36 = vadd.f32 %v775_v10, %v517_v28  ;;  %v536_v37 = vadd.f32 %v775_v10, %v521_v29 }
  0xed   : > { %848 = vpow2.f32 %v778_v30  ;;  %v779_v38 = vmul.f32 -1.442695, %v534_v32  ;;  %v783_v39 = vmul.f32 -1.442695, %v538_v33 }
  0xee   : > { %850 = vpow2.f32 %v782_v31  ;;  %v777_v40 = vmul.f32 -1.442695, %v532_v36  ;;  %v781_v41 = vmul.f32 -1.442695, %v536_v37 }
  0xef   : > { %852 = vpow2.f32 %v776_v34 }
  0xf0   : > { %854 = vpow2.f32 %v780_v35 }
  0xf1   : > { %856 = vpow2.f32 %v779_v38 }
  0xf2   : > { %858 = vpow2.f32 %v783_v39 }
  0xf3   : > { %860 = vpow2.f32 %v777_v40 }
  0xf4   : > { %862 = vpow2.f32 %v781_v41 }
  0xf7   : > { %v849_v42 = vpop.eup %848 }
  0xf8   : > { %v851_v43 = vpop.eup %850  ;;  %v565_v44 = vadd.f32 1.0, %v849_v42 }
  0xf9   : > { %v853_v45 = vpop.eup %852  ;;  %v569_v46 = vadd.f32 1.0, %v851_v43 }
  0xfa   : > { %v855_v47 = vpop.eup %854  ;;  %864 = vrcp.f32 %v565_v44  ;;  %v563_v48 = vadd.f32 1.0, %v853_v45 }
  0xfb   : > { %v857_v49 = vpop.eup %856  ;;  %866 = vrcp.f32 %v569_v46  ;;  %v567_v50 = vadd.f32 1.0, %v855_v47 }
  0xfc   : > { %v859_v51 = vpop.eup %858  ;;  %868 = vrcp.f32 %v563_v48  ;;  %v566_v52 = vadd.f32 1.0, %v857_v49 }
  0xfd   : > { %v861_v53 = vpop.eup %860  ;;  %870 = vrcp.f32 %v567_v50  ;;  %v570_v54 = vadd.f32 1.0, %v859_v51 }
  0xfe   : > { %v863_v55 = vpop.eup %862  ;;  %872 = vrcp.f32 %v566_v52  ;;  %v564_v56 = vadd.f32 1.0, %v861_v53 }
  0xff   : > { %874 = vrcp.f32 %v570_v54  ;;  %v568_v57 = vadd.f32 1.0, %v863_v55 }
 0x100   : > { %876 = vrcp.f32 %v564_v56 }
 0x101   : > { %878 = vrcp.f32 %v568_v57 }
 0x104   : > { %v865_v58 = vpop.eup %864 }
 0x105   : > { %v867_v59 = vpop.eup %866  ;;  %v589_v60 = vmul.f32 %v865_v58, %v533_v20 }
 0x106   : > { %v869_v61 = vpop.eup %868  ;;  %v593_v62 = vmul.f32 %v867_v59, %v537_v21 }
 0x107   : > { %v871_v63 = vpop.eup %870  ;;  %597 = vst [vmem:[%s329_s10 + $0x10] sm:$0xff] %v589_v60  ;;  %v587_v0 = vmul.f32 %v869_v61, %v531_v26 }
 0x108   : > { %v873_v1 = vpop.eup %872  ;;  %601 = vst [vmem:[%s329_s10 + $0x30] sm:$0xff] %v593_v62  ;;  %v591_v2 = vmul.f32 %v871_v63, %v535_v27 }
 0x109   : > { %v875_v3 = vpop.eup %874  ;;  %595 = vst [vmem:[%s329_s10] sm:$0xff] %v587_v0  ;;  %v590_v4 = vmul.f32 %v873_v1, %v534_v32 }
 0x10a   : > { %v877_v5 = vpop.eup %876  ;;  %599 = vst [vmem:[%s329_s10 + $0x20] sm:$0xff] %v591_v2  ;;  %v594_v6 = vmul.f32 %v875_v3, %v538_v33 }
 0x10b   : > { %v879_v7 = vpop.eup %878  ;;  %598 = vst [vmem:[%s329_s10 + $0x18] sm:$0xff] %v590_v4  ;;  %v588_v8 = vmul.f32 %v877_v5, %v532_v36 }
 0x10c   : > { %602 = vst [vmem:[%s329_s10 + $0x38] sm:$0xff] %v594_v6  ;;  %v592_v9 = vmul.f32 %v879_v7, %v536_v37 }
 0x10d   : > { %596 = vst [vmem:[%s329_s10 + $0x8] sm:$0xff] %v588_v8 }
 0x10e   : > { %600 = vst [vmem:[%s329_s10 + $0x28] sm:$0xff] %v592_v9 }
 0x10f PF: > { %s14_s17 = sadd.s32 1, %s902_s17   ;;  %s986_s15 = smov %s898_s16 }
 0x110   : > { %p11_p5 = scmp.ge.s32.totalorder %s14_s17, 4   ;;  %s987_s16 = smov %s989_s18 }
 0x112   :  { %13 = sbr.rel (!%p11_p5) target bundleno = 2 (0x2), region = 83 }

</bundles_post_ra>
